<compile_context>
chip_gen: v6e
topology: v6e:2x2x1
jax: 0.10.0
libtpu: 0.0.40
codegen_flags: <defaults>
</compile_context>

<pallas_src>
import functools

import jax
import jax.numpy as jnp
from jax.experimental import pallas as pl
from jax.experimental.pallas import tpu as pltpu


def _round_up(x, m):
    return ((x + m - 1) // m) * m


def _bert_output_kernel(h_ref, w_ref, b_ref, res_ref, g_ref, beta_ref, o_ref, *, eps):
    # Dense: [TM, I] @ [I, H] with f32 accumulation on the MXU.  The activation
    # tile is cast to the weight dtype (bf16 on the fast path) inside the
    # kernel so the original f32 activations stream from HBM only once.
    a = h_ref[...]
    w = w_ref[...]
    if a.dtype != w.dtype:
        a = a.astype(w.dtype)
    x = jnp.dot(a, w, preferred_element_type=jnp.float32)

    # Bias + residual: single implicit (1,H)->(TM,H) broadcasts, all f32.
    x = x + b_ref[...]
    # TODO(synk): StableDropout is identity in eval mode; training-mode dropout not implemented.
    x = x + res_ref[...].astype(jnp.float32)

    # TF-style LayerNorm (epsilon inside the sqrt); f32 math, rsqrt on the EUP.
    u = jnp.mean(x, axis=-1, keepdims=True)
    d = x - u
    s = jnp.mean(d * d, axis=-1, keepdims=True)
    xn = d * jax.lax.rsqrt(s + eps)

    o_ref[...] = (g_ref[...] * xn + beta_ref[...]).astype(o_ref.dtype)


def bert_output(hidden_states, input_states, weight, bias, gamma, beta,
                *, eps=1e-12, tile_m=256, matmul_dtype=jnp.bfloat16,
                vmem_budget_bytes=48 * 1024 * 1024):
    """Fused dense -> (eval) dropout -> residual add -> TF LayerNorm.

    hidden_states: [B, S, I]; input_states: [B, S, H];
    weight: [I, H] (transpose of torch nn.Linear.weight); bias/gamma/beta: [H].
    """
    B, S, I = hidden_states.shape
    H = input_states.shape[-1]
    M = B * S

    out_dtype = hidden_states.dtype
    act_bytes = jnp.dtype(hidden_states.dtype).itemsize
    out_bytes = jnp.dtype(out_dtype).itemsize

    # Cast the (parameter) weight once in the wrapper; halves weight DMA/VMEM.
    w = weight if matmul_dtype is None else weight.astype(matmul_dtype)
    w_bytes = jnp.dtype(w.dtype).itemsize

    def vmem_estimate(tm):
        resident = I * H * w_bytes + 3 * H * 4            # single-buffered params
        streamed_in = 2 * tm * (I + H) * act_bytes        # double-buffered inputs
        streamed_out = 2 * tm * H * out_bytes             # double-buffered output
        return resident + streamed_in + streamed_out

    # Pick the largest tile_m that fits the VMEM budget (>= 8 sublanes).
    tile_m = max(8, min(_round_up(tile_m, 8), _round_up(M, 8)))
    while tile_m > 8 and vmem_estimate(tile_m) > vmem_budget_bytes:
        tile_m = max(8, _round_up(tile_m // 2, 8))
    # v7x has 2 TensorCores: if everything landed in one grid step but there is
    # enough work for two full-MXU tiles, split the parallel M axis in two.
    if _round_up(M, tile_m) // tile_m < 2 and _round_up(M, 8) >= 256:
        tile_m = _round_up(-(-M // 2), 8)

    Mp = _round_up(M, tile_m)
    grid_m = Mp // tile_m

    # Flatten + pad rows to a tile multiple (zero rows are sliced off below;
    # LN of a zero row is finite since eps > 0).
    h2 = hidden_states.reshape(M, I)
    r2 = input_states.reshape(M, H)
    if Mp != M:
        h2 = jnp.pad(h2, ((0, Mp - M), (0, 0)))
        r2 = jnp.pad(r2, ((0, Mp - M), (0, 0)))
    b2 = bias.astype(jnp.float32).reshape(1, H)
    g2 = gamma.astype(jnp.float32).reshape(1, H)
    be2 = beta.astype(jnp.float32).reshape(1, H)

    kernel = functools.partial(_bert_output_kernel, eps=eps)

    cost = pl.CostEstimate(
        flops=2 * Mp * I * H,
        transcendentals=0,
        bytes_accessed=(Mp * I * act_bytes + I * H * w_bytes
                        + Mp * H * act_bytes + Mp * H * out_bytes + 3 * H * 4),
    )
    vmem_limit = int(min(max(vmem_estimate(tile_m) * 5 // 4 + (2 << 20),
                             16 * 1024 * 1024),
                         64 * 1024 * 1024))

    def _resident_spec(shape, single_buffer):
        # Grid-invariant block: no need to double-buffer it.
        if single_buffer:
            return pl.BlockSpec(shape, lambda i: (0, 0),
                                pipeline_mode=pl.Buffered(1))
        return pl.BlockSpec(shape, lambda i: (0, 0))

    def _build(single_buffer):
        return pl.pallas_call(
            kernel,
            out_shape=jax.ShapeDtypeStruct((Mp, H), out_dtype),
            grid_spec=pltpu.PrefetchScalarGridSpec(
                num_scalar_prefetch=0,
                grid=(grid_m,),
                in_specs=[
                    pl.BlockSpec((tile_m, I), lambda i: (i, 0)),   # hidden tile
                    _resident_spec((I, H), single_buffer),         # dense weight
                    _resident_spec((1, H), single_buffer),         # dense bias
                    pl.BlockSpec((tile_m, H), lambda i: (i, 0)),   # residual tile
                    _resident_spec((1, H), single_buffer),         # LN gamma
                    _resident_spec((1, H), single_buffer),         # LN beta
                ],
                out_specs=pl.BlockSpec((tile_m, H), lambda i: (i, 0)),
            ),
            compiler_params=pltpu.CompilerParams(
                dimension_semantics=("parallel",),
                vmem_limit_bytes=vmem_limit,
            ),
            cost_estimate=cost,
        )

    try:
        out = _build(single_buffer=True)(h2, w, b2, r2, g2, be2)
    except Exception:
        # Conservative fallback if this build rejects single-buffering.
        out = _build(single_buffer=False)(h2, w, b2, r2, g2, be2)

    if Mp != M:
        out = out[:M]
    return out.reshape(B, S, H)


def bert_output_ref(hidden_states, input_states, weight, bias, gamma, beta, eps=1e-12):
    x = jnp.einsum("bsi,ih->bsh", hidden_states, weight,
                   precision=jax.lax.Precision.HIGHEST) + bias
    x = x + input_states
    x = x.astype(jnp.float32)
    u = jnp.mean(x, axis=-1, keepdims=True)
    s = jnp.mean((x - u) ** 2, axis=-1, keepdims=True)
    xn = (x - u) / jnp.sqrt(s + eps)
    return gamma * xn + beta


if __name__ == "__main__":
    # Small config consistent with the module; H=128 keeps output stores lane-dense.
    B, S, INTER, HID = 2, 8, 256, 128
    eps = 1e-12

    key = jax.random.PRNGKey(0)
    k_h, k_r, k_w, k_b = jax.random.split(key, 4)

    hidden_states = jax.random.normal(k_h, (B, S, INTER), dtype=jnp.float32)
    input_states = jax.random.normal(k_r, (B, S, HID), dtype=jnp.float32)

    # Deterministic parameter init (synthetic, not a checkpoint load)
    weight = jax.random.normal(k_w, (INTER, HID), dtype=jnp.float32) * 0.02
    bias = jax.random.normal(k_b, (HID,), dtype=jnp.float32) * 0.02
    gamma = jnp.ones((HID,), dtype=jnp.float32)   # BertLayerNorm.weight
    beta = jnp.zeros((HID,), dtype=jnp.float32)   # BertLayerNorm.bias

    ref = bert_output_ref(hidden_states, input_states, weight, bias, gamma, beta, eps=eps)

    # Fast path: bf16 matmul operands, f32 accumulation + LayerNorm.
    out_bf16 = bert_output(hidden_states, input_states, weight, bias, gamma, beta,
                           eps=eps, matmul_dtype=jnp.bfloat16)
    out_bf16 = jax.block_until_ready(out_bf16)
    assert out_bf16.shape == (B, S, HID)
    assert jnp.allclose(out_bf16, ref, atol=2e-2, rtol=2e-2), "bf16 path mismatch vs reference"

    # Exact path: full f32 matmul, tight tolerance.
    out_f32 = bert_output(hidden_states, input_states, weight, bias, gamma, beta,
                          eps=eps, matmul_dtype=None)
    out_f32 = jax.block_until_ready(out_f32)
    assert out_f32.shape == (B, S, HID)
    assert jnp.allclose(out_f32, ref, atol=1e-4, rtol=1e-4), "f32 path mismatch vs reference"

    print("KERNEL_OK")
</pallas_src>

<mosaic_0001>
module attributes {stable_mosaic.version = 11 : i64} {
  func.func @_bert_output_kernel(%arg0: i32, %arg1: memref<16x256xf32, #tpu.memory_space<vmem>>, %arg2: memref<256x128xbf16, #tpu.memory_space<vmem>>, %arg3: memref<1x128xf32, #tpu.memory_space<vmem>>, %arg4: memref<16x128xf32, #tpu.memory_space<vmem>>, %arg5: memref<1x128xf32, #tpu.memory_space<vmem>>, %arg6: memref<1x128xf32, #tpu.memory_space<vmem>>, %arg7: memref<16x128xf32, #tpu.memory_space<vmem>>) attributes {dimension_semantics = [#tpu.dimension_semantics<parallel>], iteration_bounds = array<i64: 1>, scalar_prefetch = 0 : i64, scratch_operands = 0 : i64, tpu.core_type = #tpu.core_type<tc>, window_params = [{transform_indices = @transform_0, window_bounds = array<i64: 16, 256>}, {pipeline_mode = #tpu.pipeline_mode<synchronous>, transform_indices = @transform_1, window_bounds = array<i64: 256, 128>}, {pipeline_mode = #tpu.pipeline_mode<synchronous>, transform_indices = @transform_2, window_bounds = array<i64: 1, 128>}, {transform_indices = @transform_3, window_bounds = array<i64: 16, 128>}, {pipeline_mode = #tpu.pipeline_mode<synchronous>, transform_indices = @transform_4, window_bounds = array<i64: 1, 128>}, {pipeline_mode = #tpu.pipeline_mode<synchronous>, transform_indices = @transform_5, window_bounds = array<i64: 1, 128>}, {transform_indices = @transform_6, window_bounds = array<i64: 16, 128>}]} {
    %c0 = arith.constant 0 : index
    %c0_0 = arith.constant 0 : index
    %0 = vector.load %arg1[%c0, %c0_0] : memref<16x256xf32, #tpu.memory_space<vmem>>, vector<16x256xf32>
    %c0_1 = arith.constant 0 : index
    %c0_2 = arith.constant 0 : index
    %1 = vector.load %arg2[%c0_1, %c0_2] : memref<256x128xbf16, #tpu.memory_space<vmem>>, vector<256x128xbf16>
    %2 = arith.truncf %0 : vector<16x256xf32> to vector<16x256xbf16>
    %cst = arith.constant dense<0.000000e+00> : vector<16x128xf32>
    %3 = tpu.matmul %2, %1, %cst {dimension_numbers = #tpu.dot_dimension_numbers<[1], [0], [0], [1], [0, 0, 1, 1], [], []>} : vector<16x256xbf16>, vector<256x128xbf16>, vector<16x128xf32> -> vector<16x128xf32>
    %c0_3 = arith.constant 0 : index
    %c0_4 = arith.constant 0 : index
    %4 = vector.load %arg3[%c0_3, %c0_4] : memref<1x128xf32, #tpu.memory_space<vmem>>, vector<1x128xf32>
    %5 = vector.broadcast %4 : vector<1x128xf32> to vector<16x128xf32>
    %6 = arith.addf %3, %5 : vector<16x128xf32>
    %c0_5 = arith.constant 0 : index
    %c0_6 = arith.constant 0 : index
    %7 = vector.load %arg4[%c0_5, %c0_6] : memref<16x128xf32, #tpu.memory_space<vmem>>, vector<16x128xf32>
    %8 = arith.addf %6, %7 : vector<16x128xf32>
    %cst_7 = arith.constant dense<0.000000e+00> : vector<16xf32>
    %9 = vector.multi_reduction <add>, %8, %cst_7 [1] : vector<16x128xf32> to vector<16xf32>
    %10 = vector.shape_cast %9 : vector<16xf32> to vector<16x1xf32>
    %cst_8 = arith.constant 1.280000e+02 : f32
    %11 = vector.broadcast %cst_8 : f32 to vector<16x1xf32>
    %12 = arith.divf %10, %11 : vector<16x1xf32>
    %13 = vector.broadcast %12 : vector<16x1xf32> to vector<16x128xf32>
    %14 = arith.subf %8, %13 : vector<16x128xf32>
    %15 = arith.mulf %14, %14 : vector<16x128xf32>
    %cst_9 = arith.constant dense<0.000000e+00> : vector<16xf32>
    %16 = vector.multi_reduction <add>, %15, %cst_9 [1] : vector<16x128xf32> to vector<16xf32>
    %17 = vector.shape_cast %16 : vector<16xf32> to vector<16x1xf32>
    %cst_10 = arith.constant 1.280000e+02 : f32
    %18 = vector.broadcast %cst_10 : f32 to vector<16x1xf32>
    %19 = arith.divf %17, %18 : vector<16x1xf32>
    %cst_11 = arith.constant 9.99999996E-13 : f32
    %20 = vector.broadcast %cst_11 : f32 to vector<16x1xf32>
    %21 = arith.addf %19, %20 : vector<16x1xf32>
    %22 = math.rsqrt %21 : vector<16x1xf32>
    %23 = vector.broadcast %22 : vector<16x1xf32> to vector<16x128xf32>
    %24 = arith.mulf %14, %23 : vector<16x128xf32>
    %c0_12 = arith.constant 0 : index
    %c0_13 = arith.constant 0 : index
    %25 = vector.load %arg5[%c0_12, %c0_13] : memref<1x128xf32, #tpu.memory_space<vmem>>, vector<1x128xf32>
    %26 = vector.broadcast %25 : vector<1x128xf32> to vector<16x128xf32>
    %27 = arith.mulf %26, %24 : vector<16x128xf32>
    %c0_14 = arith.constant 0 : index
    %c0_15 = arith.constant 0 : index
    %28 = vector.load %arg6[%c0_14, %c0_15] : memref<1x128xf32, #tpu.memory_space<vmem>>, vector<1x128xf32>
    %29 = vector.broadcast %28 : vector<1x128xf32> to vector<16x128xf32>
    %30 = arith.addf %27, %29 : vector<16x128xf32>
    %c0_16 = arith.constant 0 : index
    %c0_17 = arith.constant 0 : index
    %31 = vector.load %arg7[%c0_16, %c0_17] : memref<16x128xf32, #tpu.memory_space<vmem>>, vector<16x128xf32>
    tpu.vector_store %arg7[%c0_16, %c0_17], %30 {strides = array<i32>} : memref<16x128xf32, #tpu.memory_space<vmem>>, vector<16x128xf32>,
    return
  }
  func.func @transform_0(%arg0: i32) -> (i32, i32) {
    %c0_i32 = arith.constant 0 : i32
    %c0_i32_0 = arith.constant 0 : i32
    return %arg0, %c0_i32 : i32, i32
  }
  func.func @transform_1(%arg0: i32) -> (i32, i32) {
    %c0_i32 = arith.constant 0 : i32
    %c0_i32_0 = arith.constant 0 : i32
    %c0_i32_1 = arith.constant 0 : i32
    return %c0_i32, %c0_i32_0 : i32, i32
  }
  func.func @transform_2(%arg0: i32) -> (i32, i32) {
    %c0_i32 = arith.constant 0 : i32
    %c0_i32_0 = arith.constant 0 : i32
    %c0_i32_1 = arith.constant 0 : i32
    return %c0_i32, %c0_i32_0 : i32, i32
  }
  func.func @transform_3(%arg0: i32) -> (i32, i32) {
    %c0_i32 = arith.constant 0 : i32
    %c0_i32_0 = arith.constant 0 : i32
    return %arg0, %c0_i32 : i32, i32
  }
  func.func @transform_4(%arg0: i32) -> (i32, i32) {
    %c0_i32 = arith.constant 0 : i32
    %c0_i32_0 = arith.constant 0 : i32
    %c0_i32_1 = arith.constant 0 : i32
    return %c0_i32, %c0_i32_0 : i32, i32
  }
  func.func @transform_5(%arg0: i32) -> (i32, i32) {
    %c0_i32 = arith.constant 0 : i32
    %c0_i32_0 = arith.constant 0 : i32
    %c0_i32_1 = arith.constant 0 : i32
    return %c0_i32, %c0_i32_0 : i32, i32
  }
  func.func @transform_6(%arg0: i32) -> (i32, i32) {
    %c0_i32 = arith.constant 0 : i32
    %c0_i32_0 = arith.constant 0 : i32
    return %arg0, %c0_i32 : i32, i32
  }
}

module attributes {stable_mosaic.version = 11 : i64} {
  func.func @_bert_output_kernel(%arg0: i32, %arg1: memref<16x256xf32, #tpu.memory_space<vmem>>, %arg2: memref<256x128xbf16, #tpu.memory_space<vmem>>, %arg3: memref<1x128xf32, #tpu.memory_space<vmem>>, %arg4: memref<16x128xf32, #tpu.memory_space<vmem>>, %arg5: memref<1x128xf32, #tpu.memory_space<vmem>>, %arg6: memref<1x128xf32, #tpu.memory_space<vmem>>, %arg7: memref<16x128xf32, #tpu.memory_space<vmem>>) attributes {dimension_semantics = [#tpu.dimension_semantics<parallel>], iteration_bounds = array<i64: 1>, scalar_prefetch = 0 : i64, scratch_operands = 0 : i64, tpu.core_type = #tpu.core_type<tc>, window_params = [{transform_indices = @transform_0, window_bounds = array<i64: 16, 256>}, {pipeline_mode = #tpu.pipeline_mode<synchronous>, transform_indices = @transform_1, window_bounds = array<i64: 256, 128>}, {pipeline_mode = #tpu.pipeline_mode<synchronous>, transform_indices = @transform_2, window_bounds = array<i64: 1, 128>}, {transform_indices = @transform_3, window_bounds = array<i64: 16, 128>}, {pipeline_mode = #tpu.pipeline_mode<synchronous>, transform_indices = @transform_4, window_bounds = array<i64: 1, 128>}, {pipeline_mode = #tpu.pipeline_mode<synchronous>, transform_indices = @transform_5, window_bounds = array<i64: 1, 128>}, {transform_indices = @transform_6, window_bounds = array<i64: 16, 128>}]} {
    %c0 = arith.constant 0 : index
    %c0_0 = arith.constant 0 : index
    %0 = vector.load %arg1[%c0, %c0_0] : memref<16x256xf32, #tpu.memory_space<vmem>>, vector<16x256xf32>
    %c0_1 = arith.constant 0 : index
    %c0_2 = arith.constant 0 : index
    %1 = vector.load %arg2[%c0_1, %c0_2] : memref<256x128xbf16, #tpu.memory_space<vmem>>, vector<256x128xbf16>
    %2 = arith.truncf %0 : vector<16x256xf32> to vector<16x256xbf16>
    %cst = arith.constant dense<0.000000e+00> : vector<16x128xf32>
    %3 = tpu.matmul %2, %1, %cst {dimension_numbers = #tpu.dot_dimension_numbers<[1], [0], [0], [1], [0, 0, 1, 1], [], []>} : vector<16x256xbf16>, vector<256x128xbf16>, vector<16x128xf32> -> vector<16x128xf32>
    %c0_3 = arith.constant 0 : index
    %c0_4 = arith.constant 0 : index
    %4 = vector.load %arg3[%c0_3, %c0_4] : memref<1x128xf32, #tpu.memory_space<vmem>>, vector<1x128xf32>
    %5 = vector.broadcast %4 : vector<1x128xf32> to vector<16x128xf32>
    %6 = arith.addf %3, %5 : vector<16x128xf32>
    %c0_5 = arith.constant 0 : index
    %c0_6 = arith.constant 0 : index
    %7 = vector.load %arg4[%c0_5, %c0_6] : memref<16x128xf32, #tpu.memory_space<vmem>>, vector<16x128xf32>
    %8 = arith.addf %6, %7 : vector<16x128xf32>
    %cst_7 = arith.constant dense<0.000000e+00> : vector<16xf32>
    %9 = vector.multi_reduction <add>, %8, %cst_7 [1] : vector<16x128xf32> to vector<16xf32>
    %10 = vector.shape_cast %9 : vector<16xf32> to vector<16x1xf32>
    %cst_8 = arith.constant 1.280000e+02 : f32
    %11 = vector.broadcast %cst_8 : f32 to vector<16x1xf32>
    %12 = arith.divf %10, %11 : vector<16x1xf32>
    %13 = vector.broadcast %12 : vector<16x1xf32> to vector<16x128xf32>
    %14 = arith.subf %8, %13 : vector<16x128xf32>
    %15 = arith.mulf %14, %14 : vector<16x128xf32>
    %cst_9 = arith.constant dense<0.000000e+00> : vector<16xf32>
    %16 = vector.multi_reduction <add>, %15, %cst_9 [1] : vector<16x128xf32> to vector<16xf32>
    %17 = vector.shape_cast %16 : vector<16xf32> to vector<16x1xf32>
    %cst_10 = arith.constant 1.280000e+02 : f32
    %18 = vector.broadcast %cst_10 : f32 to vector<16x1xf32>
    %19 = arith.divf %17, %18 : vector<16x1xf32>
    %cst_11 = arith.constant 9.99999996E-13 : f32
    %20 = vector.broadcast %cst_11 : f32 to vector<16x1xf32>
    %21 = arith.addf %19, %20 : vector<16x1xf32>
    %22 = math.rsqrt %21 : vector<16x1xf32>
    %23 = vector.broadcast %22 : vector<16x1xf32> to vector<16x128xf32>
    %24 = arith.mulf %14, %23 : vector<16x128xf32>
    %c0_12 = arith.constant 0 : index
    %c0_13 = arith.constant 0 : index
    %25 = vector.load %arg5[%c0_12, %c0_13] : memref<1x128xf32, #tpu.memory_space<vmem>>, vector<1x128xf32>
    %26 = vector.broadcast %25 : vector<1x128xf32> to vector<16x128xf32>
    %27 = arith.mulf %26, %24 : vector<16x128xf32>
    %c0_14 = arith.constant 0 : index
    %c0_15 = arith.constant 0 : index
    %28 = vector.load %arg6[%c0_14, %c0_15] : memref<1x128xf32, #tpu.memory_space<vmem>>, vector<1x128xf32>
    %29 = vector.broadcast %28 : vector<1x128xf32> to vector<16x128xf32>
    %30 = arith.addf %27, %29 : vector<16x128xf32>
    %c0_16 = arith.constant 0 : index
    %c0_17 = arith.constant 0 : index
    %31 = vector.load %arg7[%c0_16, %c0_17] : memref<16x128xf32, #tpu.memory_space<vmem>>, vector<16x128xf32>
    tpu.vector_store %arg7[%c0_16, %c0_17], %30 {strides = array<i32>} : memref<16x128xf32, #tpu.memory_space<vmem>>, vector<16x128xf32>,
    return
  }
  func.func @transform_0(%arg0: i32) -> (i32, i32) {
    %c0_i32 = arith.constant 0 : i32
    %c0_i32_0 = arith.constant 0 : i32
    return %arg0, %c0_i32 : i32, i32
  }
  func.func @transform_1(%arg0: i32) -> (i32, i32) {
    %c0_i32 = arith.constant 0 : i32
    %c0_i32_0 = arith.constant 0 : i32
    %c0_i32_1 = arith.constant 0 : i32
    return %c0_i32, %c0_i32_0 : i32, i32
  }
  func.func @transform_2(%arg0: i32) -> (i32, i32) {
    %c0_i32 = arith.constant 0 : i32
    %c0_i32_0 = arith.constant 0 : i32
    %c0_i32_1 = arith.constant 0 : i32
    return %c0_i32, %c0_i32_0 : i32, i32
  }
  func.func @transform_3(%arg0: i32) -> (i32, i32) {
    %c0_i32 = arith.constant 0 : i32
    %c0_i32_0 = arith.constant 0 : i32
    return %arg0, %c0_i32 : i32, i32
  }
  func.func @transform_4(%arg0: i32) -> (i32, i32) {
    %c0_i32 = arith.constant 0 : i32
    %c0_i32_0 = arith.constant 0 : i32
    %c0_i32_1 = arith.constant 0 : i32
    return %c0_i32, %c0_i32_0 : i32, i32
  }
  func.func @transform_5(%arg0: i32) -> (i32, i32) {
    %c0_i32 = arith.constant 0 : i32
    %c0_i32_0 = arith.constant 0 : i32
    %c0_i32_1 = arith.constant 0 : i32
    return %c0_i32, %c0_i32_0 : i32, i32
  }
  func.func @transform_6(%arg0: i32) -> (i32, i32) {
    %c0_i32 = arith.constant 0 : i32
    %c0_i32_0 = arith.constant 0 : i32
    return %arg0, %c0_i32 : i32, i32
  }
}

</mosaic_0001>

<bundles_post_ra>
// kernel: tpu_custom_call.1
= control target key start
LH: loop header
LB: loop body
LE: loop exit
PB: predicated region body
PF: predicated region fallthrough
CT: control target
= control target key end

     0   :  { %11 = vsyncpa [#allocation3], 0  ;;  %s542_s0 = inlined_call_operand.hbm [shape: f32[16,256], index: 0, kind: input, shape index: {}]   ;;  %s543_s1 = inlined_call_operand.hbm [shape: bf16[256,128], index: 1, kind: input, shape index: {}]   ;;  %s544_s2 = inlined_call_operand.vmem [shape: f32[1,128], index: 2, kind: input, shape index: {}]   ;;  %s545_s3 = inlined_call_operand.hbm [shape: f32[16,128], index: 3, kind: input, shape index: {}]   ;;  %s546_s4 = inlined_call_operand.vmem [shape: f32[1,128], index: 4, kind: input, shape index: {}]   ;;  %s547_s5 = inlined_call_operand.vmem [shape: f32[1,128], index: 5, kind: input, shape index: {}]   ;;  %s548_s6 = inlined_call_operand.hbm [shape: f32[16,128], index: 6, kind: output, shape index: {}]  }
   0x1   :  { %12 = vsyncpa [#allocation6], 0 }
   0x2   :  { %13 = vsyncpa [#allocation4], 0  ;;  %s470_s21 = smov [#allocation5]  }
   0x3   :  { %s31_s22 = sshll.u32 %s470_s21, 4  ;;  %s32_s22 = int_to_ptr.vmem [resolvable:$true] %s31_s22 }
   0x4   :  { %s392_s23 = scalar_lea.vmem %s32_s22, 2048  ;;  %p397_p1 = scmp.lt.s32.totalorder %s32_s22, %s32_s22 }
   0x5   :  { %p393_p0 = scmp.ne.s32.totalorder %s32_s22, %s392_s23  ;;  %p398_p2 = scmp.lt.s32.totalorder %s392_s23, %s392_s23 }
   0x7   :  { %p399_p3 = por %p398_p2, %p397_p1 }
   0x9   :  { %p400_p4 = pnand %p399_p3, %p393_p0 }
   0xb   :  { %403 = shalt.err (!%p400_p4)
}
   0xc   :  { %s471_s24 = smov 64   ;;  %s472_s25 = smov 4  }
   0xd   :  { %37 = dma.hbm_to_vmem [thread:$0]  %s543_s1, 2048, %s32_s22, [#allocation6], %s471_s24, %s471_s24, %s472_s25  }
   0xe   :  { %s473_s28 = smov [#allocation2]  }
   0xf   :  { %s19_s29 = sshll.u32 %s473_s28, 4  ;;  %s20_s29 = int_to_ptr.vmem [resolvable:$true] %s19_s29 }
  0x10   :  { %s412_s30 = scalar_lea.vmem %s20_s29, 512  ;;  %p417_p6 = scmp.lt.s32.totalorder %s20_s29, %s20_s29 }
  0x11   :  { %p413_p5 = scmp.ne.s32.totalorder %s20_s29, %s412_s30  ;;  %p418_p7 = scmp.lt.s32.totalorder %s412_s30, %s412_s30 }
  0x13   :  { %p419_p8 = por %p418_p7, %p417_p6 }
  0x15   :  { %p420_p9 = pnand %p419_p8, %p413_p5 }
  0x17   :  { %423 = shalt.err (!%p420_p9)
}
  0x18   :  { %s474_s7 = smov 256   ;;  %s475_s8 = smov 16  }
  0x19   :  { %25 = dma.hbm_to_vmem [thread:$0]  %s542_s0, 512, %s20_s29, [#allocation3], %s474_s7, %s474_s7, %s475_s8  }
  0x1a   :  { %s476_s11 = smov [#allocation7]  }
  0x1b   :  { %s45_s12 = sshll.u32 %s476_s11, 4  ;;  %s46_s12 = int_to_ptr.vmem [resolvable:$true] %s45_s12 }
  0x1c   :  { %s432_s1 = scalar_lea.vmem %s46_s12, 256  ;;  %p437_p11 = scmp.lt.s32.totalorder %s46_s12, %s46_s12 }
  0x1d   :  { %p433_p10 = scmp.ne.s32.totalorder %s46_s12, %s432_s1  ;;  %p438_p12 = scmp.lt.s32.totalorder %s432_s1, %s432_s1 }
  0x1f   :  { %p439_p13 = por %p438_p12, %p437_p11 }
  0x21   :  { %p440_p0 = pnand %p439_p13, %p433_p10 }
  0x23   :  { %443 = shalt.err (!%p440_p0)
}
  0x24   :  { %s477_s13 = smov 128   ;;  %s478_s14 = smov 8  }
  0x25   :  { %51 = dma.hbm_to_vmem [thread:$0]  %s545_s3, 256, %s46_s12, [#allocation6], %s477_s13, %s477_s13, %s478_s14  }
  0x26   :  { %464 = dma.done.wait [#allocation3], 512  }
  0x27   :  { %465 = vsyncadd [#allocation3], 4294966784 }
  0x28   :  { %466 = dma.done.wait [#allocation6], 2304  }
  0x29   :  { %467 = vsyncadd [#allocation6], 4294964992  ;;  %v364_v0 = vld [vmem:[#allocation5 + $0x78] sm:$0xff]   ;;  %v366_v2 = vld [vmem:[#allocation5 + $0x70] sm:$0xff]   ;;  %s479_s20 = smov [#allocation8]  }
  0x2a   :  { %v365_v1 = vld [vmem:[#allocation5 + $0x38] sm:$0xff]   ;;  %332 = vmatprep.subr.bf16.mxu0 %v364_v0  ;;  %v367_v3 = vld [vmem:[#allocation5 + $0x30] sm:$0xff]   ;;  %v368_v4 = vld [vmem:[#allocation5 + $0x68] sm:$0xff]   ;;  %s300_s21 = sshll.u32 %s479_s20, 4  ;;  %s301_s21 = int_to_ptr.vmem [resolvable:$true] %s300_s21 }
  0x2b   :  { %333 = vmatpush3.bf16.msra.mxu0 %v365_v1  ;;  %v369_v5 = vld [vmem:[#allocation5 + $0x28] sm:$0xff]   ;;  %v370_v6 = vld [vmem:[#allocation5 + $0x60] sm:$0xff]   ;;  %v372_v8 = vld [vmem:[#allocation5 + $0x58] sm:$0xff]   ;;  %s444_s22 = scalar_lea.vmem %s301_s21, 256  ;;  %p449_p2 = scmp.lt.s32.totalorder %s301_s21, %s301_s21 }
  0x2c   :  { %334 = vmatprep.subr.bf16.mxu0 %v366_v2  ;;  %v371_v7 = vld [vmem:[#allocation5 + $0x20] sm:$0xff]   ;;  %v373_v9 = vld [vmem:[#allocation5 + $0x18] sm:$0xff]   ;;  %v374_v10 = vld [vmem:[#allocation5 + $0x50] sm:$0xff]   ;;  %p445_p1 = scmp.ne.s32.totalorder %s301_s21, %s444_s22  ;;  %p450_p3 = scmp.lt.s32.totalorder %s444_s22, %s444_s22 }
  0x2d   :  { %v67_v11 = vld [vmem:[#allocation2 + $0x8] sm:$0xff]  ;;  %v69_v12 = vld [vmem:[#allocation2 + $0x18] sm:$0xff]  ;;  %v375_v14 = vld [vmem:[#allocation5 + $0x10] sm:$0xff]  }
  0x2e   :  { %v103_v13 = vpack.c.bf16 %v69_v12, %v67_v11  ;;  %v376_v15 = vld [vmem:[#allocation5 + $0x48] sm:$0xff]   ;;  %v378_v17 = vld [vmem:[#allocation5 + $0x40] sm:$0xff]   ;;  %v68_v20 = vld [vmem:[#allocation2 + $0x10] sm:$0xff]  ;;  %p451_p4 = por %p450_p3, %p449_p2 }
  0x2f   :  { %335 = vmatpush3.bf16.msra.mxu0 %v367_v3  ;;  %v377_v16 = vld [vmem:[#allocation5 + $0x8] sm:$0xff]   ;;  %v379_v18 = vld [vmem:[#allocation5] sm:$0xff]  }
  0x30   :  { %336 = vmatprep.subr.bf16.mxu0 %v368_v4  ;;  %239 = vmatprep.mubr.bf16.mxu0 %v103_v13  ;;  %v66_v19 = vld [vmem:[#allocation2] sm:$0xff]  ;;  %v249_v32 = vld [vmem:[#allocation7 + $0x8] sm:$0xff]  ;;  %p452_p5 = pnand %p451_p4, %p445_p1 }
  0x31   :  { %v102_v21 = vpack.c.bf16 %v68_v20, %v66_v19  ;;  %v313_v23 = vld [vmem:[%s544_s2] ss:$0 sm:$0xff] }
  0x32   :  { %v248_v27 = vld [vmem:[#allocation7] sm:$0xff] }
  0x33   :  { %337 = vmatpush3.bf16.msra.mxu0 %v369_v5  ;;  %v330_v50 = vld [vmem:[%s546_s4] ss:$0 sm:$0xff] }
  0x34   :  { %338 = vmatprep.subr.bf16.mxu0 %v370_v6  ;;  %v331_v52 = vld [vmem:[%s547_s5] ss:$0 sm:$0xff] }
  0x37   :  { %339 = vmatpush3.bf16.msra.mxu0 %v371_v7 }
  0x38   :  { %340 = vmatprep.subr.bf16.mxu0 %v372_v8 }
  0x3b   :  { %341 = vmatpush3.bf16.msra.mxu0 %v373_v9 }
  0x3c   :  { %342 = vmatprep.subr.bf16.mxu0 %v374_v10 }
  0x3f   :  { %343 = vmatpush3.bf16.msra.mxu0 %v375_v14 }
  0x40   :  { %344 = vmatprep.subr.bf16.mxu0 %v376_v15 }
  0x43   :  { %345 = vmatpush3.bf16.msra.mxu0 %v377_v16 }
  0x44   :  { %346 = vmatprep.subr.bf16.mxu0 %v378_v17 }
  0x47   :  { %347 = vmatpush3.bf16.msra.mxu0 %v379_v18 }
  0x4a   :  { %240 = vmatmul.mubr.bf16.vlgmr.msra.gmra.mxu0 %v102_v21 }
 0x10a   :  { %v348_v22 = vpop.f32.mrf.mxu0 }
 0x10c   :  { %v349_v24 = vpop.f32.mrf.mxu0 }
 0x10d   :  { %v350_v25 = vadd.f32 %v349_v24, %v348_v22 }
 0x10e   :  { %v351_v26 = vpop.f32.mrf.mxu0 }
 0x10f   :  { %v242_v28 = vadd.f32 %v350_v25, %v313_v23 }
 0x110   :  { %v352_v29 = vpop.f32.mrf.mxu0 }
 0x111   :  { %v353_v30 = vadd.f32 %v352_v29, %v351_v26  ;;  %v250_v31 = vadd.f32 %v248_v27, %v242_v28 }
 0x113   :  { %v245_v33 = vadd.f32 %v353_v30, %v313_v23  ;;  %252 = vadd.xlane.f32.xlu0 %v250_v31 }
 0x115   :  { %v251_v34 = vadd.f32 %v249_v32, %v245_v33 }
 0x117   :  { %254 = vadd.xlane.f32.xlu0 %v251_v34 }
 0x19c   :  { %v253_v35 = vpop.xlane.xlu0 %252 }
 0x19d   :  { %v257_v36 = vmul.f32 0.0078125, %v253_v35 }
 0x19f   :  { %v259_v37 = vsub.f32 %v250_v31, %v257_v36 }
 0x1a0   :  { %v255_v38 = vpop.xlane.xlu0 %254 }
 0x1a1   :  { %v258_v39 = vmul.f32 0.0078125, %v255_v38  ;;  %v261_v40 = vmul.f32 %v259_v37, %v259_v37 }
 0x1a3   :  { %v260_v41 = vsub.f32 %v251_v34, %v258_v39  ;;  %263 = vadd.xlane.f32.xlu1 %v261_v40 }
 0x1a5   :  { %v262_v42 = vmul.f32 %v260_v41, %v260_v41 }
 0x1a7   :  { %265 = vadd.xlane.f32.xlu1 %v262_v42 }
 0x22c   :  { %v264_v43 = vpop.xlane.xlu1 %263 }
 0x22d   :  { %v267_v44 = vmul.f32 0.0078125, %v264_v43 }
 0x22f   :  { %v269_v45 = vadd.f32 1e-12, %v267_v44 }
 0x230   :  { %v266_v46 = vpop.xlane.xlu1 %265 }
 0x231   :  { %380 = vrsqrt.f32 %v269_v45  ;;  %v268_v47 = vmul.f32 0.0078125, %v266_v46 }
 0x233   :  { %v270_v48 = vadd.f32 1e-12, %v268_v47 }
 0x235   :  { %382 = vrsqrt.f32 %v270_v48 }
 0x23e   :  { %v381_v49 = vpop.eup %380 }
 0x23f   :  { %v273_v51 = vmul.f32 %v381_v49, %v259_v37 }
 0x241   :  { %v282_v53 = vmul.f32 %v330_v50, %v273_v51 }
 0x242   :  { %v383_v54 = vpop.eup %382 }
 0x243   :  { %v274_v55 = vmul.f32 %v383_v54, %v260_v41  ;;  %v291_v56 = vadd.f32 %v331_v52, %v282_v53 }
 0x245   :  { %v283_v57 = vmul.f32 %v330_v50, %v274_v55  ;;  %293 = vst [vmem:[#allocation8] sm:$0xff] %v291_v56 }
 0x247   :  { %v292_v58 = vadd.f32 %v331_v52, %v283_v57 }
 0x249   :  { %294 = vst [vmem:[#allocation8 + $0x8] sm:$0xff] %v292_v58 }
 0x24a   :  { %455 = shalt.err (!%p452_p5)
}
 0x24b   :  { %306 = dma.vmem_to_hbm [thread:$0]  %s301_s21, 256, %s548_s6, [#allocation4], %s477_s13, %s477_s13, %s478_s14  }
 0x24c   :  { %468 = dma.done.wait [#allocation4], 256  }
 0x24d   :  { %469 = vsyncadd [#allocation4], 4294967040 }
 0x24e   :  { %310 = vsyncpa [#allocation3], 1 }
 0x24f   :  { %311 = vsyncpa [#allocation6], 1 }
 0x250   :  { %312 = vsyncpa [#allocation4], 1 }

// kernel: tpu_custom_call.1
= control target key start
LH: loop header
LB: loop body
LE: loop exit
PB: predicated region body
PF: predicated region fallthrough
CT: control target
= control target key end

     0   :  { %11 = vsyncpa [#allocation3], 0  ;;  %s542_s0 = inlined_call_operand.hbm [shape: f32[16,256], index: 0, kind: input, shape index: {}]   ;;  %s543_s1 = inlined_call_operand.hbm [shape: bf16[256,128], index: 1, kind: input, shape index: {}]   ;;  %s544_s2 = inlined_call_operand.vmem [shape: f32[1,128], index: 2, kind: input, shape index: {}]   ;;  %s545_s3 = inlined_call_operand.hbm [shape: f32[16,128], index: 3, kind: input, shape index: {}]   ;;  %s546_s4 = inlined_call_operand.vmem [shape: f32[1,128], index: 4, kind: input, shape index: {}]   ;;  %s547_s5 = inlined_call_operand.vmem [shape: f32[1,128], index: 5, kind: input, shape index: {}]   ;;  %s548_s6 = inlined_call_operand.hbm [shape: f32[16,128], index: 6, kind: output, shape index: {}]  }
   0x1   :  { %12 = vsyncpa [#allocation6], 0 }
   0x2   :  { %13 = vsyncpa [#allocation4], 0  ;;  %s470_s21 = smov [#allocation5]  }
   0x3   :  { %s31_s22 = sshll.u32 %s470_s21, 4  ;;  %s32_s22 = int_to_ptr.vmem [resolvable:$true] %s31_s22 }
   0x4   :  { %s392_s23 = scalar_lea.vmem %s32_s22, 2048  ;;  %p397_p1 = scmp.lt.s32.totalorder %s32_s22, %s32_s22 }
   0x5   :  { %p393_p0 = scmp.ne.s32.totalorder %s32_s22, %s392_s23  ;;  %p398_p2 = scmp.lt.s32.totalorder %s392_s23, %s392_s23 }
   0x7   :  { %p399_p3 = por %p398_p2, %p397_p1 }
   0x9   :  { %p400_p4 = pnand %p399_p3, %p393_p0 }
   0xb   :  { %403 = shalt.err (!%p400_p4)
}
   0xc   :  { %s471_s24 = smov 64   ;;  %s472_s25 = smov 4  }
   0xd   :  { %37 = dma.hbm_to_vmem [thread:$0]  %s543_s1, 2048, %s32_s22, [#allocation6], %s471_s24, %s471_s24, %s472_s25  }
   0xe   :  { %s473_s28 = smov [#allocation2]  }
   0xf   :  { %s19_s29 = sshll.u32 %s473_s28, 4  ;;  %s20_s29 = int_to_ptr.vmem [resolvable:$true] %s19_s29 }
  0x10   :  { %s412_s30 = scalar_lea.vmem %s20_s29, 512  ;;  %p417_p6 = scmp.lt.s32.totalorder %s20_s29, %s20_s29 }
  0x11   :  { %p413_p5 = scmp.ne.s32.totalorder %s20_s29, %s412_s30  ;;  %p418_p7 = scmp.lt.s32.totalorder %s412_s30, %s412_s30 }
  0x13   :  { %p419_p8 = por %p418_p7, %p417_p6 }
  0x15   :  { %p420_p9 = pnand %p419_p8, %p413_p5 }
  0x17   :  { %423 = shalt.err (!%p420_p9)
}
  0x18   :  { %s474_s7 = smov 256   ;;  %s475_s8 = smov 16  }
  0x19   :  { %25 = dma.hbm_to_vmem [thread:$0]  %s542_s0, 512, %s20_s29, [#allocation3], %s474_s7, %s474_s7, %s475_s8  }
  0x1a   :  { %s476_s11 = smov [#allocation7]  }
  0x1b   :  { %s45_s12 = sshll.u32 %s476_s11, 4  ;;  %s46_s12 = int_to_ptr.vmem [resolvable:$true] %s45_s12 }
  0x1c   :  { %s432_s1 = scalar_lea.vmem %s46_s12, 256  ;;  %p437_p11 = scmp.lt.s32.totalorder %s46_s12, %s46_s12 }
  0x1d   :  { %p433_p10 = scmp.ne.s32.totalorder %s46_s12, %s432_s1  ;;  %p438_p12 = scmp.lt.s32.totalorder %s432_s1, %s432_s1 }
  0x1f   :  { %p439_p13 = por %p438_p12, %p437_p11 }
  0x21   :  { %p440_p0 = pnand %p439_p13, %p433_p10 }
  0x23   :  { %443 = shalt.err (!%p440_p0)
}
  0x24   :  { %s477_s13 = smov 128   ;;  %s478_s14 = smov 8  }
  0x25   :  { %51 = dma.hbm_to_vmem [thread:$0]  %s545_s3, 256, %s46_s12, [#allocation6], %s477_s13, %s477_s13, %s478_s14  }
  0x26   :  { %464 = dma.done.wait [#allocation3], 512  }
  0x27   :  { %465 = vsyncadd [#allocation3], 4294966784 }
  0x28   :  { %466 = dma.done.wait [#allocation6], 2304  }
  0x29   :  { %467 = vsyncadd [#allocation6], 4294964992  ;;  %v364_v0 = vld [vmem:[#allocation5 + $0x78] sm:$0xff]   ;;  %v366_v2 = vld [vmem:[#allocation5 + $0x70] sm:$0xff]   ;;  %s479_s20 = smov [#allocation8]  }
  0x2a   :  { %v365_v1 = vld [vmem:[#allocation5 + $0x38] sm:$0xff]   ;;  %332 = vmatprep.subr.bf16.mxu0 %v364_v0  ;;  %v367_v3 = vld [vmem:[#allocation5 + $0x30] sm:$0xff]   ;;  %v368_v4 = vld [vmem:[#allocation5 + $0x68] sm:$0xff]   ;;  %s300_s21 = sshll.u32 %s479_s20, 4  ;;  %s301_s21 = int_to_ptr.vmem [resolvable:$true] %s300_s21 }
  0x2b   :  { %333 = vmatpush3.bf16.msra.mxu0 %v365_v1  ;;  %v369_v5 = vld [vmem:[#allocation5 + $0x28] sm:$0xff]   ;;  %v370_v6 = vld [vmem:[#allocation5 + $0x60] sm:$0xff]   ;;  %v372_v8 = vld [vmem:[#allocation5 + $0x58] sm:$0xff]   ;;  %s444_s22 = scalar_lea.vmem %s301_s21, 256  ;;  %p449_p2 = scmp.lt.s32.totalorder %s301_s21, %s301_s21 }
  0x2c   :  { %334 = vmatprep.subr.bf16.mxu0 %v366_v2  ;;  %v371_v7 = vld [vmem:[#allocation5 + $0x20] sm:$0xff]   ;;  %v373_v9 = vld [vmem:[#allocation5 + $0x18] sm:$0xff]   ;;  %v374_v10 = vld [vmem:[#allocation5 + $0x50] sm:$0xff]   ;;  %p445_p1 = scmp.ne.s32.totalorder %s301_s21, %s444_s22  ;;  %p450_p3 = scmp.lt.s32.totalorder %s444_s22, %s444_s22 }
  0x2d   :  { %v67_v11 = vld [vmem:[#allocation2 + $0x8] sm:$0xff]  ;;  %v69_v12 = vld [vmem:[#allocation2 + $0x18] sm:$0xff]  ;;  %v375_v14 = vld [vmem:[#allocation5 + $0x10] sm:$0xff]  }
  0x2e   :  { %v103_v13 = vpack.c.bf16 %v69_v12, %v67_v11  ;;  %v376_v15 = vld [vmem:[#allocation5 + $0x48] sm:$0xff]   ;;  %v378_v17 = vld [vmem:[#allocation5 + $0x40] sm:$0xff]   ;;  %v68_v20 = vld [vmem:[#allocation2 + $0x10] sm:$0xff]  ;;  %p451_p4 = por %p450_p3, %p449_p2 }
  0x2f   :  { %335 = vmatpush3.bf16.msra.mxu0 %v367_v3  ;;  %v377_v16 = vld [vmem:[#allocation5 + $0x8] sm:$0xff]   ;;  %v379_v18 = vld [vmem:[#allocation5] sm:$0xff]  }
  0x30   :  { %336 = vmatprep.subr.bf16.mxu0 %v368_v4  ;;  %239 = vmatprep.mubr.bf16.mxu0 %v103_v13  ;;  %v66_v19 = vld [vmem:[#allocation2] sm:$0xff]  ;;  %v249_v32 = vld [vmem:[#allocation7 + $0x8] sm:$0xff]  ;;  %p452_p5 = pnand %p451_p4, %p445_p1 }
  0x31   :  { %v102_v21 = vpack.c.bf16 %v68_v20, %v66_v19  ;;  %v313_v23 = vld [vmem:[%s544_s2] ss:$0 sm:$0xff] }
  0x32   :  { %v248_v27 = vld [vmem:[#allocation7] sm:$0xff] }
  0x33   :  { %337 = vmatpush3.bf16.msra.mxu0 %v369_v5  ;;  %v330_v50 = vld [vmem:[%s546_s4] ss:$0 sm:$0xff] }
  0x34   :  { %338 = vmatprep.subr.bf16.mxu0 %v370_v6  ;;  %v331_v52 = vld [vmem:[%s547_s5] ss:$0 sm:$0xff] }
  0x37   :  { %339 = vmatpush3.bf16.msra.mxu0 %v371_v7 }
  0x38   :  { %340 = vmatprep.subr.bf16.mxu0 %v372_v8 }
  0x3b   :  { %341 = vmatpush3.bf16.msra.mxu0 %v373_v9 }
  0x3c   :  { %342 = vmatprep.subr.bf16.mxu0 %v374_v10 }
  0x3f   :  { %343 = vmatpush3.bf16.msra.mxu0 %v375_v14 }
  0x40   :  { %344 = vmatprep.subr.bf16.mxu0 %v376_v15 }
  0x43   :  { %345 = vmatpush3.bf16.msra.mxu0 %v377_v16 }
  0x44   :  { %346 = vmatprep.subr.bf16.mxu0 %v378_v17 }
  0x47   :  { %347 = vmatpush3.bf16.msra.mxu0 %v379_v18 }
  0x4a   :  { %240 = vmatmul.mubr.bf16.vlgmr.msra.gmra.mxu0 %v102_v21 }
 0x10a   :  { %v348_v22 = vpop.f32.mrf.mxu0 }
 0x10c   :  { %v349_v24 = vpop.f32.mrf.mxu0 }
 0x10d   :  { %v350_v25 = vadd.f32 %v349_v24, %v348_v22 }
 0x10e   :  { %v351_v26 = vpop.f32.mrf.mxu0 }
 0x10f   :  { %v242_v28 = vadd.f32 %v350_v25, %v313_v23 }
 0x110   :  { %v352_v29 = vpop.f32.mrf.mxu0 }
 0x111   :  { %v353_v30 = vadd.f32 %v352_v29, %v351_v26  ;;  %v250_v31 = vadd.f32 %v248_v27, %v242_v28 }
 0x113   :  { %v245_v33 = vadd.f32 %v353_v30, %v313_v23  ;;  %252 = vadd.xlane.f32.xlu0 %v250_v31 }
 0x115   :  { %v251_v34 = vadd.f32 %v249_v32, %v245_v33 }
 0x117   :  { %254 = vadd.xlane.f32.xlu0 %v251_v34 }
 0x19c   :  { %v253_v35 = vpop.xlane.xlu0 %252 }
 0x19d   :  { %v257_v36 = vmul.f32 0.0078125, %v253_v35 }
 0x19f   :  { %v259_v37 = vsub.f32 %v250_v31, %v257_v36 }
 0x1a0   :  { %v255_v38 = vpop.xlane.xlu0 %254 }
 0x1a1   :  { %v258_v39 = vmul.f32 0.0078125, %v255_v38  ;;  %v261_v40 = vmul.f32 %v259_v37, %v259_v37 }
 0x1a3   :  { %v260_v41 = vsub.f32 %v251_v34, %v258_v39  ;;  %263 = vadd.xlane.f32.xlu1 %v261_v40 }
 0x1a5   :  { %v262_v42 = vmul.f32 %v260_v41, %v260_v41 }
 0x1a7   :  { %265 = vadd.xlane.f32.xlu1 %v262_v42 }
 0x22c   :  { %v264_v43 = vpop.xlane.xlu1 %263 }
 0x22d   :  { %v267_v44 = vmul.f32 0.0078125, %v264_v43 }
 0x22f   :  { %v269_v45 = vadd.f32 1e-12, %v267_v44 }
 0x230   :  { %v266_v46 = vpop.xlane.xlu1 %265 }
 0x231   :  { %380 = vrsqrt.f32 %v269_v45  ;;  %v268_v47 = vmul.f32 0.0078125, %v266_v46 }
 0x233   :  { %v270_v48 = vadd.f32 1e-12, %v268_v47 }
 0x235   :  { %382 = vrsqrt.f32 %v270_v48 }
 0x23e   :  { %v381_v49 = vpop.eup %380 }
 0x23f   :  { %v273_v51 = vmul.f32 %v381_v49, %v259_v37 }
 0x241   :  { %v282_v53 = vmul.f32 %v330_v50, %v273_v51 }
 0x242   :  { %v383_v54 = vpop.eup %382 }
 0x243   :  { %v274_v55 = vmul.f32 %v383_v54, %v260_v41  ;;  %v291_v56 = vadd.f32 %v331_v52, %v282_v53 }
 0x245   :  { %v283_v57 = vmul.f32 %v330_v50, %v274_v55  ;;  %293 = vst [vmem:[#allocation8] sm:$0xff] %v291_v56 }
 0x247   :  { %v292_v58 = vadd.f32 %v331_v52, %v283_v57 }
 0x249   :  { %294 = vst [vmem:[#allocation8 + $0x8] sm:$0xff] %v292_v58 }
 0x24a   :  { %455 = shalt.err (!%p452_p5)
}
 0x24b   :  { %306 = dma.vmem_to_hbm [thread:$0]  %s301_s21, 256, %s548_s6, [#allocation4], %s477_s13, %s477_s13, %s478_s14  }
 0x24c   :  { %468 = dma.done.wait [#allocation4], 256  }
 0x24d   :  { %469 = vsyncadd [#allocation4], 4294967040 }
 0x24e   :  { %310 = vsyncpa [#allocation3], 1 }
 0x24f   :  { %311 = vsyncpa [#allocation6], 1 }
 0x250   :  { %312 = vsyncpa [#allocation4], 1 }

</bundles_post_ra>
